<compile_context>
chip_gen: v7x
topology: tpu7x:2x2x1
jax: 0.10.0
libtpu: 0.0.40
codegen_flags: <defaults>
</compile_context>

<pallas_src>
import functools

import jax
import jax.numpy as jnp
from jax import lax
from jax.experimental import pallas as pl
from jax.experimental.pallas import tpu as pltpu


def _round_up(x, m):
    return (x + m - 1) // m * m


def _pad_feature(d):
    """Lane-dense padding: 128-aligned, bumped to 256 when it costs <=25% extra."""
    p128 = _round_up(d, 128)
    p256 = _round_up(d, 256)
    return p256 if p256 <= int(d * 1.25) else p128


def _vmem_capacity_bytes():
    try:
        info = pltpu.get_tpu_info()
        cap = int(getattr(info, "vmem_capacity_bytes", 0))
        if cap > 0:
            return cap
    except Exception:
        pass
    return 64 << 20  # conservative fallback (v7x per-TensorCore VMEM)


def _spec(block_shape, index_map, buffer_count=None):
    """BlockSpec helper; single-buffers constant-index (resident) operands."""
    if buffer_count is None:
        return pl.BlockSpec(block_shape, index_map)
    try:
        return pl.BlockSpec(block_shape, index_map,
                            pipeline_mode=pl.Buffered(buffer_count))
    except TypeError:  # older jax without pipeline_mode: default buffering
        return pl.BlockSpec(block_shape, index_map)


# --------------------------- Kernel 1: x @ W1^T + BN stats ---------------------
def _matmul1_stats_kernel(x_ref, w1t_ref, h_ref, psum_ref, psumsq_ref, acc_ref):
    k = pl.program_id(1)

    @pl.when(k == 0)
    def _():
        acc_ref[...] = jnp.zeros_like(acc_ref)

    acc_ref[...] += jnp.dot(x_ref[...], w1t_ref[...],
                            preferred_element_type=jnp.float32)

    @pl.when(k == pl.num_programs(1) - 1)
    def _():
        h = acc_ref[...]                                   # (tile_n, h_p) f32
        h_ref[...] = h.astype(h_ref.dtype)                 # bf16 stash -> HBM
        # Per-sublane partial sums: pure VALU adds across vregs; the 8->1
        # cross-sublane reduction happens once in the JAX wrapper.
        h3 = h.reshape(h.shape[0] // 8, 8, h.shape[1])
        psum_ref[...] = jnp.sum(h3, axis=0)
        psumsq_ref[...] = jnp.sum(h3 * h3, axis=0)


# ------------------- Kernel 2: folded BN + ReLU + h @ W2^T ---------------------
def _norm_matmul2_kernel(h_ref, scale_ref, shift_ref, w2t_ref, o_ref):
    h = h_ref[...].astype(jnp.float32)
    h = jnp.maximum(h * scale_ref[...] + shift_ref[...], 0.0)   # BN + ReLU in f32
    o_ref[...] = jnp.dot(h.astype(jnp.bfloat16), w2t_ref[...],
                         preferred_element_type=jnp.float32).astype(o_ref.dtype)


def mlp_forward(x, w1, w2, gamma, beta, *, eps=1e-5, out_dtype=jnp.float32,
                tile_n=None):
    """x: (N, D_in); w1: (H, D_in); w2: (D_out, H); gamma/beta: (H,).

    Returns (N, D_out) in out_dtype (f32 by default, matching the PyTorch module).
    """
    n, d_in = x.shape
    h_dim, d_in2 = w1.shape
    d_out, h_dim2 = w2.shape
    assert d_in2 == d_in and h_dim2 == h_dim

    f32, bf16 = jnp.float32, jnp.bfloat16

    h_p = _pad_feature(h_dim)
    d_out_p = _pad_feature(d_out)

    # K (= D_in) tiling: whole-K resident for small D_in; otherwise stream 512-wide
    # K slabs so the W1^T footprint stays bounded on v7x's 64 MiB VMEM.
    d_in_p = _pad_feature(d_in)
    if d_in_p <= 2048:
        tile_k = d_in_p
    else:
        tile_k = 512
        d_in_p = _round_up(d_in, tile_k)
    k_tiles = d_in_p // tile_k

    out_bytes = jnp.dtype(out_dtype).itemsize
    vmem_phys = _vmem_capacity_bytes()

    if tile_n is None:
        # Streamed bytes per batch row (double-buffered ins/outs + f32 accumulator),
        # worst of the two calls; keep the streamed footprint within ~1/4 of VMEM.
        row1 = 2 * tile_k * 2 + 2 * h_p * 2 + h_p * 4
        row2 = 2 * h_p * 2 + 2 * d_out_p * out_bytes + h_p * 4
        row = max(row1, row2)
        tile_n = 512 if vmem_phys >= (100 << 20) else 256   # v5e/v6e vs v7x
        while tile_n > 64 and tile_n * row > vmem_phys // 4:
            tile_n //= 2
    tile_n = min(tile_n, _round_up(n, 8))
    assert tile_n % 8 == 0
    n_p = _round_up(n, tile_n)
    n_tiles = n_p // tile_n

    # Zero padding contributes exactly 0 to the BN statistics; padded rows/cols
    # are sliced off at the end.
    x_p = jnp.zeros((n_p, d_in_p), bf16).at[:n, :d_in].set(x.astype(bf16))
    w1t_p = jnp.zeros((d_in_p, h_p), bf16).at[:d_in, :h_dim].set(w1.T.astype(bf16))
    w2t_p = jnp.zeros((h_p, d_out_p), bf16).at[:h_dim, :d_out].set(w2.T.astype(bf16))
    gamma_p = jnp.zeros((h_p,), f32).at[:h_dim].set(gamma.astype(f32))
    beta_p = jnp.zeros((h_p,), f32).at[:h_dim].set(beta.astype(f32))

    # ------------------- Call 1: h = x @ W1^T (K-tiled) + partial BN sums -------
    w1_bufs = 1 if k_tiles == 1 else 2
    vmem1 = (2 * tile_n * tile_k * 2          # x tiles (double-buffered)
             + w1_bufs * tile_k * h_p * 2     # W1^T
             + 2 * tile_n * h_p * 2           # h stash tiles (double-buffered)
             + 2 * 2 * 8 * h_p * 4            # psum / psumsq output tiles
             + tile_n * h_p * 4)              # f32 accumulator scratch
    limit1 = min(max(int(vmem1 * 1.5) + (4 << 20), 16 << 20),
                 max(vmem_phys - (8 << 20), 32 << 20))
    assert vmem1 <= limit1, "call-1 VMEM footprint too large; shrink tile_n/tile_k"

    w1_stream = (n_tiles if k_tiles > 1 else 1) * d_in_p * h_p * 2
    h_stash, psum, psumsq = pl.pallas_call(
        _matmul1_stats_kernel,
        out_shape=(jax.ShapeDtypeStruct((n_p, h_p), bf16),
                   jax.ShapeDtypeStruct((n_tiles * 8, h_p), f32),
                   jax.ShapeDtypeStruct((n_tiles * 8, h_p), f32)),
        grid_spec=pltpu.PrefetchScalarGridSpec(
            num_scalar_prefetch=0,
            grid=(n_tiles, k_tiles),                       # reduction axis last
            in_specs=[
                _spec((tile_n, tile_k), lambda i, k: (i, k)),          # x tile
                _spec((tile_k, h_p), lambda i, k: (k, 0),              # W1^T slab
                      buffer_count=1 if k_tiles == 1 else None),
            ],
            out_specs=(
                _spec((tile_n, h_p), lambda i, k: (i, 0)),             # h stash
                _spec((8, h_p), lambda i, k: (i, 0)),                  # partial sum
                _spec((8, h_p), lambda i, k: (i, 0)),                  # partial sumsq
            ),
            scratch_shapes=[pltpu.VMEM((tile_n, h_p), f32)],
        ),
        compiler_params=pltpu.CompilerParams(
            dimension_semantics=("parallel", "arbitrary"),
            vmem_limit_bytes=limit1,
        ),
        cost_estimate=pl.CostEstimate(
            flops=2 * n_p * d_in_p * h_p,
            transcendentals=0,
            bytes_accessed=(n_p * d_in_p * 2 + w1_stream
                            + n_p * h_p * 2 + 2 * n_tiles * 8 * h_p * 4)),
    )(x_p, w1t_p)

    # ------------------- Tiny JAX fold: BatchNorm -> per-feature scale/shift ----
    inv_n = 1.0 / n                                       # true batch size, not n_p
    s = jnp.sum(psum, axis=0)                             # (h_p,) f32
    ss = jnp.sum(psumsq, axis=0)
    mean = s * inv_n
    var = jnp.maximum(ss * inv_n - mean * mean, 0.0)      # biased, single-pass
    scale = gamma_p * lax.rsqrt(var + eps)
    shift = beta_p - mean * scale
    scale = scale.reshape(1, h_p)
    shift = shift.reshape(1, h_p)

    # ------------------- Call 2: (h*scale + shift) -> ReLU -> @ W2^T ------------
    vmem2 = (2 * tile_n * h_p * 2             # h tiles (double-buffered)
             + h_p * d_out_p * 2              # W2^T (single-buffered, resident)
             + 2 * h_p * 4                    # scale + shift (resident)
             + 2 * tile_n * d_out_p * out_bytes   # output tiles (double-buffered)
             + tile_n * h_p * 4)              # f32 normalized intermediate
    limit2 = min(max(int(vmem2 * 1.5) + (4 << 20), 16 << 20),
                 max(vmem_phys - (8 << 20), 32 << 20))
    assert vmem2 <= limit2, "call-2 VMEM footprint too large; shrink tile_n"

    out_p = pl.pallas_call(
        _norm_matmul2_kernel,
        out_shape=jax.ShapeDtypeStruct((n_p, d_out_p), out_dtype),
        grid_spec=pltpu.PrefetchScalarGridSpec(
            num_scalar_prefetch=0,
            grid=(n_tiles,),
            in_specs=[
                _spec((tile_n, h_p), lambda i: (i, 0)),                # h tile
                _spec((1, h_p), lambda i: (0, 0), buffer_count=1),     # scale
                _spec((1, h_p), lambda i: (0, 0), buffer_count=1),     # shift
                _spec((h_p, d_out_p), lambda i: (0, 0), buffer_count=1),  # W2^T
            ],
            out_specs=_spec((tile_n, d_out_p), lambda i: (i, 0)),
        ),
        compiler_params=pltpu.CompilerParams(
            dimension_semantics=("parallel",),
            vmem_limit_bytes=limit2,
        ),
        cost_estimate=pl.CostEstimate(
            flops=2 * n_p * h_p * d_out_p,
            transcendentals=0,
            bytes_accessed=(n_p * h_p * 2 + h_p * d_out_p * 2 + 2 * h_p * 4
                            + n_p * d_out_p * out_bytes)),
    )(h_stash, scale, shift, w2t_p)

    return out_p[:n, :d_out]


if __name__ == "__main__":
    # Small shapes consistent with the module: N nodes, input/hidden/output dims.
    N, D_IN, HIDDEN, D_OUT = 8, 16, 32, 16

    key = jax.random.PRNGKey(0)
    kx, kw1, kw2 = jax.random.split(key, 3)

    x = jax.random.normal(kx, (N, D_IN), dtype=jnp.float32)
    # Deterministic synthetic parameters (no checkpoint loading).
    w1 = jax.random.normal(kw1, (HIDDEN, D_IN), dtype=jnp.float32) * 0.1
    w2 = jax.random.normal(kw2, (D_OUT, HIDDEN), dtype=jnp.float32) * 0.1
    gamma = jnp.ones((HIDDEN,), dtype=jnp.float32)   # BatchNorm1d default weight
    beta = jnp.zeros((HIDDEN,), dtype=jnp.float32)   # BatchNorm1d default bias

    out = mlp_forward(x, w1, w2, gamma, beta)
    out = jax.block_until_ready(out)
    assert out.shape == (N, D_OUT)

    # Reference 1: same math as the kernels (bf16 matmul operands, f32 stats,
    # bf16 h stash between the two matmuls).
    xb = x.astype(jnp.bfloat16)
    w1tb = w1.T.astype(jnp.bfloat16)
    w2tb = w2.T.astype(jnp.bfloat16)
    h32 = jnp.dot(xb, w1tb, preferred_element_type=jnp.float32)
    m_b = h32.mean(axis=0)
    v_b = jnp.maximum((h32 * h32).mean(axis=0) - m_b * m_b, 0.0)
    sc_b = gamma * lax.rsqrt(v_b + 1e-5)
    sh_b = beta - m_b * sc_b
    hq = h32.astype(jnp.bfloat16).astype(jnp.float32)
    hn = jnp.maximum(hq * sc_b + sh_b, 0.0)
    ref_bf16 = jnp.dot(hn.astype(jnp.bfloat16), w2tb,
                       preferred_element_type=jnp.float32).astype(out.dtype)
    assert jnp.allclose(out, ref_bf16, atol=2e-3, rtol=2e-3)

    # Reference 2: exact f32 PyTorch-equivalent forward (training-mode BatchNorm1d).
    h_ref = x @ w1.T
    m = h_ref.mean(axis=0, keepdims=True)
    v = ((h_ref - m) ** 2).mean(axis=0, keepdims=True)
    h_ref = (h_ref - m) / jnp.sqrt(v + 1e-5) * gamma + beta
    ref_f32 = jnp.maximum(h_ref, 0.0) @ w2.T
    assert jnp.allclose(out, ref_f32, atol=5e-2, rtol=5e-2)

    print("KERNEL_OK")
</pallas_src>

<mosaic_0001>
module attributes {stable_mosaic.version = 11 : i64} {
  func.func @_matmul1_stats_kernel(%arg0: i32, %arg1: i32, %arg2: memref<8x128xbf16, #tpu.memory_space<vmem>>, %arg3: memref<128x128xbf16, #tpu.memory_space<vmem>>, %arg4: memref<8x128xbf16, #tpu.memory_space<vmem>>, %arg5: memref<8x128xf32, #tpu.memory_space<vmem>>, %arg6: memref<8x128xf32, #tpu.memory_space<vmem>>, %arg7: memref<8x128xf32, #tpu.memory_space<vmem>>) attributes {dimension_semantics = [#tpu.dimension_semantics<parallel>, #tpu.dimension_semantics<arbitrary>], iteration_bounds = array<i64: 1, 1>, scalar_prefetch = 0 : i64, scratch_operands = 1 : i64, tpu.core_type = #tpu.core_type<tc>, window_params = [{transform_indices = @transform_0, window_bounds = array<i64: 8, 128>}, {pipeline_mode = #tpu.pipeline_mode<synchronous>, transform_indices = @transform_1, window_bounds = array<i64: 128, 128>}, {transform_indices = @transform_2, window_bounds = array<i64: 8, 128>}, {transform_indices = @transform_3, window_bounds = array<i64: 8, 128>}, {transform_indices = @transform_4, window_bounds = array<i64: 8, 128>}]} {
    %c0_i32 = arith.constant 0 : i32
    %0 = arith.cmpi eq, %arg1, %c0_i32 : i32
    %1 = arith.extui %0 : i1 to i32
    %c0_i32_0 = arith.constant 0 : i32
    %2 = arith.cmpi ne, %1, %c0_i32_0 : i32
    scf.if %2 {
      %cst_10 = arith.constant 0.000000e+00 : f32
      %12 = vector.broadcast %cst_10 : f32 to vector<8x128xf32>
      %c0_11 = arith.constant 0 : index
      %c0_12 = arith.constant 0 : index
      %13 = vector.load %arg7[%c0_11, %c0_12] : memref<8x128xf32, #tpu.memory_space<vmem>>, vector<8x128xf32>
      tpu.vector_store %arg7[%c0_11, %c0_12], %12 {strides = array<i32>} : memref<8x128xf32, #tpu.memory_space<vmem>>, vector<8x128xf32>,
    } else {
    }
    %c0 = arith.constant 0 : index
    %c0_1 = arith.constant 0 : index
    %3 = vector.load %arg7[%c0, %c0_1] : memref<8x128xf32, #tpu.memory_space<vmem>>, vector<8x128xf32>
    %c0_2 = arith.constant 0 : index
    %c0_3 = arith.constant 0 : index
    %4 = vector.load %arg2[%c0_2, %c0_3] : memref<8x128xbf16, #tpu.memory_space<vmem>>, vector<8x128xbf16>
    %c0_4 = arith.constant 0 : index
    %c0_5 = arith.constant 0 : index
    %5 = vector.load %arg3[%c0_4, %c0_5] : memref<128x128xbf16, #tpu.memory_space<vmem>>, vector<128x128xbf16>
    %cst = arith.constant dense<0.000000e+00> : vector<8x128xf32>
    %6 = tpu.matmul %4, %5, %cst {dimension_numbers = #tpu.dot_dimension_numbers<[1], [0], [0], [1], [0, 0, 1, 1], [], []>} : vector<8x128xbf16>, vector<128x128xbf16>, vector<8x128xf32> -> vector<8x128xf32>
    %7 = arith.addf %3, %6 : vector<8x128xf32>
    %c0_6 = arith.constant 0 : index
    %c0_7 = arith.constant 0 : index
    %8 = vector.load %arg7[%c0_6, %c0_7] : memref<8x128xf32, #tpu.memory_space<vmem>>, vector<8x128xf32>
    tpu.vector_store %arg7[%c0_6, %c0_7], %7 {strides = array<i32>} : memref<8x128xf32, #tpu.memory_space<vmem>>, vector<8x128xf32>,
    %c0_i32_8 = arith.constant 0 : i32
    %9 = arith.cmpi eq, %arg1, %c0_i32_8 : i32
    %10 = arith.extui %9 : i1 to i32
    %c0_i32_9 = arith.constant 0 : i32
    %11 = arith.cmpi ne, %10, %c0_i32_9 : i32
    scf.if %11 {
      %c0_10 = arith.constant 0 : index
      %c0_11 = arith.constant 0 : index
      %12 = vector.load %arg7[%c0_10, %c0_11] : memref<8x128xf32, #tpu.memory_space<vmem>>, vector<8x128xf32>
      %13 = arith.truncf %12 : vector<8x128xf32> to vector<8x128xbf16>
      %c0_12 = arith.constant 0 : index
      %c0_13 = arith.constant 0 : index
      %14 = vector.load %arg4[%c0_12, %c0_13] : memref<8x128xbf16, #tpu.memory_space<vmem>>, vector<8x128xbf16>
      tpu.vector_store %arg4[%c0_12, %c0_13], %13 {strides = array<i32>} : memref<8x128xbf16, #tpu.memory_space<vmem>>, vector<8x128xbf16>,
      %15 = vector.shape_cast %12 : vector<8x128xf32> to vector<1x8x128xf32>
      %cst_14 = arith.constant dense<0.000000e+00> : vector<8x128xf32>
      %16 = vector.multi_reduction <add>, %15, %cst_14 [0] : vector<1x8x128xf32> to vector<8x128xf32>
      %c0_15 = arith.constant 0 : index
      %c0_16 = arith.constant 0 : index
      %17 = vector.load %arg5[%c0_15, %c0_16] : memref<8x128xf32, #tpu.memory_space<vmem>>, vector<8x128xf32>
      tpu.vector_store %arg5[%c0_15, %c0_16], %16 {strides = array<i32>} : memref<8x128xf32, #tpu.memory_space<vmem>>, vector<8x128xf32>,
      %18 = arith.mulf %15, %15 : vector<1x8x128xf32>
      %cst_17 = arith.constant dense<0.000000e+00> : vector<8x128xf32>
      %19 = vector.multi_reduction <add>, %18, %cst_17 [0] : vector<1x8x128xf32> to vector<8x128xf32>
      %c0_18 = arith.constant 0 : index
      %c0_19 = arith.constant 0 : index
      %20 = vector.load %arg6[%c0_18, %c0_19] : memref<8x128xf32, #tpu.memory_space<vmem>>, vector<8x128xf32>
      tpu.vector_store %arg6[%c0_18, %c0_19], %19 {strides = array<i32>} : memref<8x128xf32, #tpu.memory_space<vmem>>, vector<8x128xf32>,
    } else {
    }
    return
  }
  func.func @transform_0(%arg0: i32, %arg1: i32) -> (i32, i32) {
    %c0_i32 = arith.constant 0 : i32
    return %arg0, %arg1 : i32, i32
  }
  func.func @transform_1(%arg0: i32, %arg1: i32) -> (i32, i32) {
    %c0_i32 = arith.constant 0 : i32
    %c0_i32_0 = arith.constant 0 : i32
    return %arg1, %c0_i32 : i32, i32
  }
  func.func @transform_2(%arg0: i32, %arg1: i32) -> (i32, i32) {
    %c0_i32 = arith.constant 0 : i32
    %c0_i32_0 = arith.constant 0 : i32
    return %arg0, %c0_i32 : i32, i32
  }
  func.func @transform_3(%arg0: i32, %arg1: i32) -> (i32, i32) {
    %c0_i32 = arith.constant 0 : i32
    %c0_i32_0 = arith.constant 0 : i32
    return %arg0, %c0_i32 : i32, i32
  }
  func.func @transform_4(%arg0: i32, %arg1: i32) -> (i32, i32) {
    %c0_i32 = arith.constant 0 : i32
    %c0_i32_0 = arith.constant 0 : i32
    return %arg0, %c0_i32 : i32, i32
  }
}

</mosaic_0001>

<bundles_post_ra>
// kernel: tpu_custom_call.1
= control target key start
LH: loop header
LB: loop body
LE: loop exit
PB: predicated region body
PF: predicated region fallthrough
CT: control target
= control target key end

     0   :  { %10 = vsyncpa [#allocation4], 0  ;;  %s497_s0 = inlined_call_operand.hbm [shape: bf16[8,128], index: 0, kind: input, shape index: {}]   ;;  %s498_s1 = inlined_call_operand.hbm [shape: bf16[128,128], index: 1, kind: input, shape index: {}]   ;;  %s499_s2 = inlined_call_operand.hbm [shape: bf16[8,128], index: 2, kind: output, shape index: {0}]   ;;  %s500_s3 = inlined_call_operand.hbm [shape: f32[8,128], index: 3, kind: output, shape index: {1}]   ;;  %s501_s4 = inlined_call_operand.hbm [shape: f32[8,128], index: 4, kind: output, shape index: {2}]  }
   0x1   :  { %11 = vsyncpa [#allocation7], 0 }
   0x2   :  { %12 = vsyncpa [#allocation5], 0 }
   0x3   :  { %13 = vsyncpa [#allocation10], 0  ;;  %s382_s15 = smov [#allocation3]   ;;  %s383_s17 = smov [#allocation6]  }
   0x4   :  { %s20_s16 = sshll.u32 %s382_s15, 4  ;;  %s29_s18 = sshll.u32 %s383_s17, 4  ;;  %s21_s16 = int_to_ptr.vmem [resolvable:$true] %s20_s16  ;;  %s416_s18 = int_to_ptr.vmem [resolvable:$true] %s29_s18 }
   0x5   :  { %s264_s21 = scalar_lea.hbm %s497_s0, 64 }
   0x6   :  { %p265_p0 = scmp.ne.s32.totalorder %s497_s0, %s264_s21  ;;  %p268_p1 = scmp.lt.u32.totalorder %s264_s21, %s497_s0 }
   0x8   :  { %p270_p2 = pnand %p268_p1, %p265_p0 }
   0xa   :  { %273 = shalt.err (!%p270_p2)
}
   0xb   :  { %s274_s26 = scalar_lea.vmem %s21_s16, 64  ;;  %p279_p4 = scmp.lt.s32.totalorder %s21_s16, %s21_s16 }
   0xc   :  { %p275_p3 = scmp.ne.s32.totalorder %s21_s16, %s274_s26  ;;  %p280_p5 = scmp.lt.s32.totalorder %s274_s26, %s274_s26 }
   0xe   :  { %p281_p6 = por %p280_p5, %p279_p4 }
  0x10   :  { %p282_p7 = pnand %p281_p6, %p275_p3 }
  0x12   :  { %285 = shalt.err (!%p282_p7)
}
  0x13   :  { %23 = dma.hbm_to_vmem [thread:$0]  %s497_s0, 64, %s21_s16, [#allocation4]  }
  0x14   :  { %s286_s5 = scalar_lea.hbm %s498_s1, 1024 }
  0x15   :  { %p287_p8 = scmp.ne.s32.totalorder %s498_s1, %s286_s5  ;;  %p290_p9 = scmp.lt.u32.totalorder %s286_s5, %s498_s1 }
  0x17   :  { %p292_p10 = pnand %p290_p9, %p287_p8 }
  0x19   :  { %295 = shalt.err (!%p292_p10)
}
  0x1a   :  { %s296_s10 = scalar_lea.vmem %s416_s18, 1024  ;;  %p301_p12 = scmp.lt.s32.totalorder %s416_s18, %s416_s18 }
  0x1b   :  { %p297_p11 = scmp.ne.s32.totalorder %s416_s18, %s296_s10  ;;  %p302_p13 = scmp.lt.s32.totalorder %s296_s10, %s296_s10 }
  0x1d   :  { %p303_p0 = por %p302_p13, %p301_p12 }
  0x1f   :  { %p304_p1 = pnand %p303_p0, %p297_p11 }
  0x21   :  { %307 = shalt.err (!%p304_p1)
}
  0x22   :  { %s384_s0 = smov 64   ;;  %s385_s11 = smov 4  }
  0x23   :  { %35 = dma.hbm_to_vmem [thread:$0]  %s498_s1, 1024, %s416_s18, [#allocation7], %s384_s0, %s384_s0, %s385_s11  }
  0x24   :  { %374 = dma.done.wait [#allocation4], 64  }
  0x25   :  { %375 = vsyncadd [#allocation4], 4294967232 }
  0x26   :  { %376 = dma.done.wait [#allocation7], 1024  }
  0x27   :  { %377 = vsyncadd [#allocation7], 4294966272  ;;  %v386_v0 = vmov 0.0   ;;  %vm387_vm0 = vmmov 0   ;;  %v256_v1 = vld [vmem:[#allocation6] sm:$0xff]   ;;  %v257_v2 = vld [vmem:[#allocation6 + $0x8] sm:$0xff]  }
  0x28   :  { %227 = vmatprep.subr.bf16.mxu0 %v386_v0  ;;  %243 = vmatprep.mubr.msk.bf16.mxu0 %vm387_vm0, %v386_v0  ;;  %v258_v3 = vld [vmem:[#allocation6 + $0x10] sm:$0xff]   ;;  %v259_v4 = vld [vmem:[#allocation6 + $0x18] sm:$0xff]   ;;  %v260_v5 = vld [vmem:[#allocation6 + $0x20] sm:$0xff]   ;;  %s388_s1 = smov [#allocation9]   ;;  %s389_s15 = smov [#allocation8]  }
  0x29   :  { %228 = vmatpush3.bf16.msra.mxu0 %v256_v1  ;;  %v261_v6 = vld [vmem:[#allocation6 + $0x28] sm:$0xff]   ;;  %v262_v7 = vld [vmem:[#allocation6 + $0x30] sm:$0xff]   ;;  %v263_v8 = vld [vmem:[#allocation6 + $0x38] sm:$0xff]   ;;  %s183_s14 = sshll.u32 %s388_s1, 4  ;;  %s173_s16 = sshll.u32 %s389_s15, 4  ;;  %s184_s14 = int_to_ptr.vmem [resolvable:$true] %s183_s14  ;;  %s447_s16 = int_to_ptr.vmem [resolvable:$true] %s173_s16 }
  0x2a   :  { %229 = vmatprep.subr.bf16.mxu0 %v386_v0  ;;  %v49_v9 = vld [vmem:[#allocation3] sm:$0xf]  ;;  %s390_s17 = smov [#allocation11]   ;;  %s308_s19 = scalar_lea.vmem %s184_s14, 128 }
  0x2b   :  { %s193_s18 = sshll.u32 %s390_s17, 4  ;;  %p309_p2 = scmp.ne.s32.totalorder %s184_s14, %s308_s19  ;;  %s449_s18 = int_to_ptr.vmem [resolvable:$true] %s193_s18 }
  0x2c   :  { %p313_p3 = scmp.lt.s32.totalorder %s184_s14, %s184_s14  ;;  %p314_p4 = scmp.lt.s32.totalorder %s308_s19, %s308_s19 }
  0x2d   :  { %230 = vmatpush3.bf16.msra.mxu0 %v257_v2 }
  0x2e   :  { %231 = vmatprep.subr.bf16.mxu0 %v386_v0  ;;  %p315_p5 = por %p314_p4, %p313_p3 }
  0x30   :  { %p316_p6 = pnand %p315_p5, %p309_p2 }
  0x31   :  { %232 = vmatpush3.bf16.msra.mxu0 %v258_v3 }
  0x32   :  { %233 = vmatprep.subr.bf16.mxu0 %v386_v0 }
  0x35   :  { %234 = vmatpush3.bf16.msra.mxu0 %v259_v4 }
  0x36   :  { %235 = vmatprep.subr.bf16.mxu0 %v386_v0 }
  0x39   :  { %236 = vmatpush3.bf16.msra.mxu0 %v260_v5 }
  0x3a   :  { %237 = vmatprep.subr.bf16.mxu0 %v386_v0 }
  0x3d   :  { %238 = vmatpush3.bf16.msra.mxu0 %v261_v6 }
  0x3e   :  { %239 = vmatprep.subr.bf16.mxu0 %v386_v0 }
  0x41   :  { %240 = vmatpush3.bf16.msra.mxu0 %v262_v7 }
  0x42   :  { %241 = vmatprep.subr.bf16.mxu0 %v386_v0 }
  0x45   :  { %242 = vmatpush3.bf16.msra.mxu0 %v263_v8 }
  0x48   :  { %244 = vmatmul.mubr.bf16.vlgmr.msra.gmra.mrb[0].mxu0 %v49_v9 }
 0x11b   :  { %v148_v10 = vpop.f32.mrb[0].mxu0 }
 0x11c   :  { %v160_v11 = vpack.c.bf16 %v148_v10, %v148_v10  ;;  %v164_v12 = vmul.f32 %v148_v10, %v148_v10  ;;  %163 = vst [vmem:[#allocation9] sm:$0xff] %v148_v10  ;;  %v245_v13 = vpop.f32.mrb[1].mxu0 }
 0x11d   :  { %v151_v14 = vpop.f32.mrb[2].mxu0 }
 0x11e   :  { %319 = shalt.err (!%p316_p6)
}
 0x11f   :  { %s320_s22 = scalar_lea.hbm %s500_s3, 128 }
 0x120   :  { %p321_p7 = scmp.ne.s32.totalorder %s500_s3, %s320_s22  ;;  %p324_p8 = scmp.lt.u32.totalorder %s320_s22, %s500_s3 }
 0x122   :  { %p326_p9 = pnand %p324_p8, %p321_p7 }
 0x124   :  { %329 = shalt.err (!%p326_p9)
}
 0x125   :  { %186 = dma.vmem_to_hbm [thread:$0]  %s184_s14, 128, %s500_s3, [#allocation10]   ;;  %161 = vst [vmem:[#allocation8] sm:$0xf] %v160_v11  ;;  %166 = vst [vmem:[#allocation11] sm:$0xff] %v164_v12  ;;  %v246_v15 = vpop.f32.mrb[3].mxu0 }
 0x126   :  { %s330_s29 = scalar_lea.vmem %s447_s16, 64  ;;  %p335_p11 = scmp.lt.s32.totalorder %s447_s16, %s447_s16 }
 0x127   :  { %p331_p10 = scmp.ne.s32.totalorder %s447_s16, %s330_s29  ;;  %p336_p12 = scmp.lt.s32.totalorder %s330_s29, %s330_s29 }
 0x129   :  { %p337_p13 = por %p336_p12, %p335_p11 }
 0x12b   :  { %p338_p0 = pnand %p337_p13, %p331_p10 }
 0x12d   :  { %341 = shalt.err (!%p338_p0)
}
 0x12e   :  { %s342_s6 = scalar_lea.hbm %s499_s2, 64 }
 0x12f   :  { %p343_p1 = scmp.ne.s32.totalorder %s499_s2, %s342_s6  ;;  %p346_p2 = scmp.lt.u32.totalorder %s342_s6, %s499_s2 }
 0x131   :  { %p348_p3 = pnand %p346_p2, %p343_p1 }
 0x133   :  { %351 = shalt.err (!%p348_p3)
}
 0x134   :  { %176 = dma.vmem_to_hbm [thread:$0]  %s447_s16, 64, %s499_s2, [#allocation5]  }
 0x135   :  { %s352_s11 = scalar_lea.vmem %s449_s18, 128  ;;  %p357_p5 = scmp.lt.s32.totalorder %s449_s18, %s449_s18 }
 0x136   :  { %p353_p4 = scmp.ne.s32.totalorder %s449_s18, %s352_s11  ;;  %p358_p6 = scmp.lt.s32.totalorder %s352_s11, %s352_s11 }
 0x138   :  { %p359_p7 = por %p358_p6, %p357_p5 }
 0x13a   :  { %p360_p8 = pnand %p359_p7, %p353_p4 }
 0x13c   :  { %363 = shalt.err (!%p360_p8)
}
 0x13d   :  { %s364_s1 = scalar_lea.hbm %s501_s4, 128 }
 0x13e   :  { %p365_p9 = scmp.ne.s32.totalorder %s501_s4, %s364_s1  ;;  %p368_p10 = scmp.lt.u32.totalorder %s364_s1, %s501_s4 }
 0x140   :  { %p370_p11 = pnand %p368_p10, %p365_p9 }
 0x142   :  { %373 = shalt.err (!%p370_p11)
}
 0x143   :  { %196 = dma.vmem_to_hbm [thread:$0]  %s449_s18, 128, %s501_s4, [#allocation10]  }
 0x144   :  { %378 = dma.done.wait [#allocation5], 64  }
 0x145   :  { %379 = vsyncadd [#allocation5], 4294967232 }
 0x146   :  { %380 = dma.done.wait [#allocation10], 256  }
 0x147   :  { %381 = vsyncadd [#allocation10], 4294967040 }
 0x148   :  { %206 = vsyncpa [#allocation4], 1 }
 0x149   :  { %207 = vsyncpa [#allocation7], 1 }
 0x14a   :  { %208 = vsyncpa [#allocation5], 1 }
 0x14b   :  { %209 = vsyncpa [#allocation10], 1 }

</bundles_post_ra>
